<compile_context>
chip_gen: v7x
topology: tpu7x:2x2x1
jax: 0.10.0
libtpu: 0.0.40
codegen_flags: <defaults>
</compile_context>

<pallas_src>
import functools

import jax
import jax.numpy as jnp
from jax.experimental import pallas as pl
from jax.experimental.pallas import tpu as pltpu

LEAKY_SLOPE = 0.01  # F.leaky_relu default negative_slope
_BN_EPS = 1e-5      # nn.BatchNorm1d default eps
_LANE = 128


def adversary_kernel(x_ref, w1_ref, b1_ref, w2_ref, b2_ref, w3_ref, b3_ref, out_ref):
    mm_dtype = w1_ref.dtype  # bf16 or f32; accumulation is always f32

    # fc1 (bn1 folded in) + leaky_relu.  x is already in mm_dtype (cast in wrapper).
    h = jnp.dot(x_ref[...], w1_ref[...],
                preferred_element_type=jnp.float32) + b1_ref[...]
    h = jnp.maximum(h, LEAKY_SLOPE * h)

    # TODO(synk): dropout is identity here (eval-mode semantics); training-mode
    # dropout would use pltpu.prng_seed / pltpu.prng_random_bits.

    # fc2 (bn2 folded in) + leaky_relu
    h = jnp.dot(h.astype(mm_dtype), w2_ref[...],
                preferred_element_type=jnp.float32) + b2_ref[...]
    h = jnp.maximum(h, LEAKY_SLOPE * h)

    # fc3 (bn3 folded in), no activation; output is lane-padded to 128
    y = jnp.dot(h.astype(mm_dtype), w3_ref[...],
                preferred_element_type=jnp.float32) + b3_ref[...]
    out_ref[...] = y.astype(out_ref.dtype)


def prepare_params(params, *, matmul_dtype=jnp.bfloat16):
    """One-time (per checkpoint) prep: BN fold, lane padding, dtype casts.

    Returns (prepared_dict, sensitive_dim).  prepared_dict contains only arrays
    (jit-friendly pytree): w1/b1/w2/b2/w3/b3, with weights in `matmul_dtype`,
    biases as f32 rows (1, out_features), and w3/b3 padded to 128 output lanes.
    """
    def fold_bn_into_linear(bn_name, w, b):
        # bn(h) @ w + b == h @ (scale[:,None]*w) + (shift @ w + b)
        gamma = params[f"{bn_name}_gamma"]
        beta = params[f"{bn_name}_beta"]
        mean = params[f"{bn_name}_mean"]
        var = params[f"{bn_name}_var"]
        scale = gamma / jnp.sqrt(var + _BN_EPS)
        shift = beta - mean * scale
        return scale[:, None] * w, shift @ w + b

    w1, b1 = fold_bn_into_linear("bn1", params["w1"], params["b1"])
    w2, b2 = fold_bn_into_linear("bn2", params["w2"], params["b2"])
    w3, b3 = fold_bn_into_linear("bn3", params["w3"], params["b3"])

    hidden_dim, sensitive_dim = w3.shape
    out_pad = max(_LANE, pl.cdiv(sensitive_dim, _LANE) * _LANE)
    w3p = jnp.zeros((hidden_dim, out_pad), jnp.float32).at[:, :sensitive_dim].set(w3)
    b3p = jnp.zeros((out_pad,), jnp.float32).at[:sensitive_dim].set(b3)

    prepared = {
        "w1": w1.astype(matmul_dtype),
        "b1": b1[None, :].astype(jnp.float32),
        "w2": w2.astype(matmul_dtype),
        "b2": b2[None, :].astype(jnp.float32),
        "w3": w3p.astype(matmul_dtype),
        "b3": b3p[None, :].astype(jnp.float32),
    }
    return prepared, int(sensitive_dim)


def _default_block_b(B):
    if B <= 256:
        return B  # single step; latency/overhead dominated anyway
    # >= 2 grid steps (so v7x megacore has work to split), rows a multiple of 128,
    # capped at 1024 to amortize the ~0.35 us per-step overhead.
    half = pl.cdiv(B, 2)
    return min(1024, ((half + _LANE - 1) // _LANE) * _LANE)


def adversary_forward(x, prepared, *, sensitive_dim=None, out_dtype=jnp.bfloat16,
                      block_b=None, return_padded=False, vmem_limit_bytes=None):
    """x: (B, input_dim) float32 (or bf16). prepared: dict from prepare_params."""
    B, input_dim = x.shape
    w1, b1 = prepared["w1"], prepared["b1"]
    w2, b2 = prepared["w2"], prepared["b2"]
    w3, b3 = prepared["w3"], prepared["b3"]
    mm_dtype = w1.dtype
    hidden_dim = w1.shape[1]
    out_pad = w3.shape[1]

    # Cast x once in the wrapper: halves the dominant x HBM->VMEM stream for bf16.
    x = x.astype(mm_dtype)

    if block_b is None:
        block_b = _default_block_b(B)
    grid_b = pl.cdiv(B, block_b)

    if vmem_limit_bytes is None:
        operand_bytes = sum(int(a.size) * a.dtype.itemsize
                            for a in (w1, b1, w2, b2, w3, b3))
        act_bytes = block_b * (
            input_dim * x.dtype.itemsize
            + 2 * hidden_dim * 4
            + out_pad * (4 + jnp.dtype(out_dtype).itemsize))
        need = 2 * (operand_bytes + 2 * act_bytes) + (4 << 20)
        try:
            vmem_cap = int(pltpu.get_tpu_info().vmem_capacity_bytes)
        except Exception:
            vmem_cap = 64 << 20  # conservative: v7x per-TensorCore capacity
        vmem_limit_bytes = int(min(max(need, 8 << 20), vmem_cap // 2))

    resident = lambda i: (0, 0)  # weights/biases: same block every grid step
    out_padded = pl.pallas_call(
        adversary_kernel,
        out_shape=jax.ShapeDtypeStruct((B, out_pad), out_dtype),
        grid_spec=pltpu.PrefetchScalarGridSpec(
            num_scalar_prefetch=0,
            grid=(grid_b,),
            in_specs=[
                pl.BlockSpec((block_b, input_dim), lambda i: (i, 0)),  # x tile
                pl.BlockSpec(w1.shape, resident),
                pl.BlockSpec(b1.shape, resident),
                pl.BlockSpec(w2.shape, resident),
                pl.BlockSpec(b2.shape, resident),
                pl.BlockSpec(w3.shape, resident),
                pl.BlockSpec(b3.shape, resident),
            ],
            out_specs=pl.BlockSpec((block_b, out_pad), lambda i: (i, 0)),
        ),
        compiler_params=pltpu.CompilerParams(
            dimension_semantics=("parallel",),   # megacore sharding on v7x
            vmem_limit_bytes=vmem_limit_bytes,
        ),
    )(x, w1, b1, w2, b2, w3, b3)

    if return_padded or sensitive_dim is None:
        return out_padded          # let the consumer slice / fuse downstream
    return out_padded[:, :sensitive_dim]


def init_params(key, input_dim, hidden_dim, sensitive_dim):
    """Deterministic synthetic parameter init (not a checkpoint load).
    Linear weights are stored already transposed: (in, out) for x @ W."""
    ks = jax.random.split(key, 12)
    p = {}
    for i, (name, dim) in enumerate([("bn1", input_dim), ("bn2", hidden_dim),
                                     ("bn3", hidden_dim)]):
        p[f"{name}_gamma"] = 1.0 + 0.1 * jax.random.normal(ks[4 * i + 0], (dim,), jnp.float32)
        p[f"{name}_beta"] = 0.1 * jax.random.normal(ks[4 * i + 1], (dim,), jnp.float32)
        p[f"{name}_mean"] = 0.1 * jax.random.normal(ks[4 * i + 2], (dim,), jnp.float32)
        p[f"{name}_var"] = jnp.abs(1.0 + 0.1 * jax.random.normal(ks[4 * i + 3], (dim,), jnp.float32))
    kw = jax.random.split(jax.random.fold_in(key, 123), 6)
    p["w1"] = 0.1 * jax.random.normal(kw[0], (input_dim, hidden_dim), jnp.float32)
    p["b1"] = 0.1 * jax.random.normal(kw[1], (hidden_dim,), jnp.float32)
    p["w2"] = 0.1 * jax.random.normal(kw[2], (hidden_dim, hidden_dim), jnp.float32)
    p["b2"] = 0.1 * jax.random.normal(kw[3], (hidden_dim,), jnp.float32)
    p["w3"] = 0.1 * jax.random.normal(kw[4], (hidden_dim, sensitive_dim), jnp.float32)
    p["b3"] = 0.1 * jax.random.normal(kw[5], (sensitive_dim,), jnp.float32)
    return p


def adversary_reference(x, params):
    """Pure-JAX reference implementing the same eval-mode forward (unfolded BN)."""
    def bn(h, name):
        g, b, m, v = (params[f"{name}_gamma"], params[f"{name}_beta"],
                      params[f"{name}_mean"], params[f"{name}_var"])
        return (h - m) / jnp.sqrt(v + _BN_EPS) * g + b

    def lrelu(h):
        return jnp.where(h > 0, h, LEAKY_SLOPE * h)

    h = bn(x, "bn1")
    h = lrelu(h @ params["w1"] + params["b1"])
    h = bn(h, "bn2")
    h = lrelu(h @ params["w2"] + params["b2"])
    h = bn(h, "bn3")
    return h @ params["w3"] + params["b3"]


if __name__ == "__main__":
    key = jax.random.PRNGKey(0)
    B, input_dim, hidden_dim, sensitive_dim = 8, 32, 32, 4

    kx, kp, kr = jax.random.split(key, 3)
    x = jax.random.normal(kx, (B, input_dim), jnp.float32)
    params = init_params(kp, input_dim, hidden_dim, sensitive_dim)
    ref = adversary_reference(x, params)

    # --- f32 validation path: tight check (only BN-fold fp reassociation differs).
    prep_f32, sdim = prepare_params(params, matmul_dtype=jnp.float32)
    out_f32 = jax.block_until_ready(
        adversary_forward(x, prep_f32, sensitive_dim=sdim, out_dtype=jnp.float32))
    assert out_f32.shape == (B, sensitive_dim)
    assert jnp.allclose(out_f32, ref, atol=1e-4, rtol=1e-4), "f32 mismatch vs reference"

    # --- bf16 steady-state path (default): prepare once, jit the forward.
    prep_bf16, sdim = prepare_params(params)  # bf16 weights, padded output lanes
    fwd = jax.jit(functools.partial(adversary_forward, sensitive_dim=sdim))
    out_bf16 = jax.block_until_ready(fwd(x, prep_bf16))
    assert out_bf16.shape == (B, sensitive_dim)
    assert jnp.allclose(out_bf16.astype(jnp.float32), ref, atol=5e-2, rtol=5e-2), \
        "bf16 mismatch vs reference"

    # --- ragged batch: B not a multiple of block_b exercises the partial last tile.
    Br = 20
    xr = jax.random.normal(kr, (Br, input_dim), jnp.float32)
    out_r = jax.block_until_ready(
        adversary_forward(xr, prep_bf16, sensitive_dim=sdim, block_b=16))
    refr = adversary_reference(xr, params)
    assert out_r.shape == (Br, sensitive_dim)
    assert jnp.allclose(out_r.astype(jnp.float32), refr, atol=5e-2, rtol=5e-2), \
        "ragged-batch mismatch vs reference"

    print("KERNEL_OK")
</pallas_src>

<mosaic_0001>
module attributes {stable_mosaic.version = 11 : i64} {
  func.func @adversary_kernel(%arg0: i32, %arg1: memref<8x32xf32, #tpu.memory_space<vmem>>, %arg2: memref<32x32xf32, #tpu.memory_space<vmem>>, %arg3: memref<1x32xf32, #tpu.memory_space<vmem>>, %arg4: memref<32x32xf32, #tpu.memory_space<vmem>>, %arg5: memref<1x32xf32, #tpu.memory_space<vmem>>, %arg6: memref<32x128xf32, #tpu.memory_space<vmem>>, %arg7: memref<1x128xf32, #tpu.memory_space<vmem>>, %arg8: memref<8x128xf32, #tpu.memory_space<vmem>>) attributes {dimension_semantics = [#tpu.dimension_semantics<parallel>], iteration_bounds = array<i64: 1>, scalar_prefetch = 0 : i64, scratch_operands = 0 : i64, tpu.core_type = #tpu.core_type<tc>, window_params = [{transform_indices = @transform_0, window_bounds = array<i64: 8, 32>}, {pipeline_mode = #tpu.pipeline_mode<synchronous>, transform_indices = @transform_1, window_bounds = array<i64: 32, 32>}, {pipeline_mode = #tpu.pipeline_mode<synchronous>, transform_indices = @transform_2, window_bounds = array<i64: 1, 32>}, {pipeline_mode = #tpu.pipeline_mode<synchronous>, transform_indices = @transform_3, window_bounds = array<i64: 32, 32>}, {pipeline_mode = #tpu.pipeline_mode<synchronous>, transform_indices = @transform_4, window_bounds = array<i64: 1, 32>}, {pipeline_mode = #tpu.pipeline_mode<synchronous>, transform_indices = @transform_5, window_bounds = array<i64: 32, 128>}, {pipeline_mode = #tpu.pipeline_mode<synchronous>, transform_indices = @transform_6, window_bounds = array<i64: 1, 128>}, {transform_indices = @transform_7, window_bounds = array<i64: 8, 128>}]} {
    %c0 = arith.constant 0 : index
    %c0_0 = arith.constant 0 : index
    %0 = vector.load %arg1[%c0, %c0_0] : memref<8x32xf32, #tpu.memory_space<vmem>>, vector<8x32xf32>
    %c0_1 = arith.constant 0 : index
    %c0_2 = arith.constant 0 : index
    %1 = vector.load %arg2[%c0_1, %c0_2] : memref<32x32xf32, #tpu.memory_space<vmem>>, vector<32x32xf32>
    %cst = arith.constant dense<0.000000e+00> : vector<8x32xf32>
    %2 = tpu.matmul %0, %1, %cst {dimension_numbers = #tpu.dot_dimension_numbers<[1], [0], [0], [1], [0, 0, 1, 1], [], []>} : vector<8x32xf32>, vector<32x32xf32>, vector<8x32xf32> -> vector<8x32xf32>
    %c0_3 = arith.constant 0 : index
    %c0_4 = arith.constant 0 : index
    %3 = vector.load %arg3[%c0_3, %c0_4] : memref<1x32xf32, #tpu.memory_space<vmem>>, vector<1x32xf32>
    %4 = vector.broadcast %3 : vector<1x32xf32> to vector<8x32xf32>
    %5 = arith.addf %2, %4 : vector<8x32xf32>
    %cst_5 = arith.constant 0.00999999977 : f32
    %6 = vector.broadcast %cst_5 : f32 to vector<8x32xf32>
    %7 = arith.mulf %6, %5 : vector<8x32xf32>
    %8 = arith.maximumf %5, %7 : vector<8x32xf32>
    %c0_6 = arith.constant 0 : index
    %c0_7 = arith.constant 0 : index
    %9 = vector.load %arg4[%c0_6, %c0_7] : memref<32x32xf32, #tpu.memory_space<vmem>>, vector<32x32xf32>
    %cst_8 = arith.constant dense<0.000000e+00> : vector<8x32xf32>
    %10 = tpu.matmul %8, %9, %cst_8 {dimension_numbers = #tpu.dot_dimension_numbers<[1], [0], [0], [1], [0, 0, 1, 1], [], []>} : vector<8x32xf32>, vector<32x32xf32>, vector<8x32xf32> -> vector<8x32xf32>
    %c0_9 = arith.constant 0 : index
    %c0_10 = arith.constant 0 : index
    %11 = vector.load %arg5[%c0_9, %c0_10] : memref<1x32xf32, #tpu.memory_space<vmem>>, vector<1x32xf32>
    %12 = vector.broadcast %11 : vector<1x32xf32> to vector<8x32xf32>
    %13 = arith.addf %10, %12 : vector<8x32xf32>
    %cst_11 = arith.constant 0.00999999977 : f32
    %14 = vector.broadcast %cst_11 : f32 to vector<8x32xf32>
    %15 = arith.mulf %14, %13 : vector<8x32xf32>
    %16 = arith.maximumf %13, %15 : vector<8x32xf32>
    %c0_12 = arith.constant 0 : index
    %c0_13 = arith.constant 0 : index
    %17 = vector.load %arg6[%c0_12, %c0_13] : memref<32x128xf32, #tpu.memory_space<vmem>>, vector<32x128xf32>
    %cst_14 = arith.constant dense<0.000000e+00> : vector<8x128xf32>
    %18 = tpu.matmul %16, %17, %cst_14 {dimension_numbers = #tpu.dot_dimension_numbers<[1], [0], [0], [1], [0, 0, 1, 1], [], []>} : vector<8x32xf32>, vector<32x128xf32>, vector<8x128xf32> -> vector<8x128xf32>
    %c0_15 = arith.constant 0 : index
    %c0_16 = arith.constant 0 : index
    %19 = vector.load %arg7[%c0_15, %c0_16] : memref<1x128xf32, #tpu.memory_space<vmem>>, vector<1x128xf32>
    %20 = vector.broadcast %19 : vector<1x128xf32> to vector<8x128xf32>
    %21 = arith.addf %18, %20 : vector<8x128xf32>
    %c0_17 = arith.constant 0 : index
    %c0_18 = arith.constant 0 : index
    %22 = vector.load %arg8[%c0_17, %c0_18] : memref<8x128xf32, #tpu.memory_space<vmem>>, vector<8x128xf32>
    tpu.vector_store %arg8[%c0_17, %c0_18], %21 {strides = array<i32>} : memref<8x128xf32, #tpu.memory_space<vmem>>, vector<8x128xf32>,
    return
  }
  func.func @transform_0(%arg0: i32) -> (i32, i32) {
    %c0_i32 = arith.constant 0 : i32
    %c0_i32_0 = arith.constant 0 : i32
    return %arg0, %c0_i32 : i32, i32
  }
  func.func @transform_1(%arg0: i32) -> (i32, i32) {
    %c0_i32 = arith.constant 0 : i32
    %c0_i32_0 = arith.constant 0 : i32
    %c0_i32_1 = arith.constant 0 : i32
    return %c0_i32, %c0_i32_0 : i32, i32
  }
  func.func @transform_2(%arg0: i32) -> (i32, i32) {
    %c0_i32 = arith.constant 0 : i32
    %c0_i32_0 = arith.constant 0 : i32
    %c0_i32_1 = arith.constant 0 : i32
    return %c0_i32, %c0_i32_0 : i32, i32
  }
  func.func @transform_3(%arg0: i32) -> (i32, i32) {
    %c0_i32 = arith.constant 0 : i32
    %c0_i32_0 = arith.constant 0 : i32
    %c0_i32_1 = arith.constant 0 : i32
    return %c0_i32, %c0_i32_0 : i32, i32
  }
  func.func @transform_4(%arg0: i32) -> (i32, i32) {
    %c0_i32 = arith.constant 0 : i32
    %c0_i32_0 = arith.constant 0 : i32
    %c0_i32_1 = arith.constant 0 : i32
    return %c0_i32, %c0_i32_0 : i32, i32
  }
  func.func @transform_5(%arg0: i32) -> (i32, i32) {
    %c0_i32 = arith.constant 0 : i32
    %c0_i32_0 = arith.constant 0 : i32
    %c0_i32_1 = arith.constant 0 : i32
    return %c0_i32, %c0_i32_0 : i32, i32
  }
  func.func @transform_6(%arg0: i32) -> (i32, i32) {
    %c0_i32 = arith.constant 0 : i32
    %c0_i32_0 = arith.constant 0 : i32
    %c0_i32_1 = arith.constant 0 : i32
    return %c0_i32, %c0_i32_0 : i32, i32
  }
  func.func @transform_7(%arg0: i32) -> (i32, i32) {
    %c0_i32 = arith.constant 0 : i32
    %c0_i32_0 = arith.constant 0 : i32
    return %arg0, %c0_i32 : i32, i32
  }
}

</mosaic_0001>

<bundles_post_ra>
// kernel: tpu_custom_call.1
= control target key start
LH: loop header
LB: loop body
LE: loop exit
PB: predicated region body
PF: predicated region fallthrough
CT: control target
= control target key end

     0   :  { %12 = vsyncpa [#allocation3], 0  ;;  %s690_s0 = inlined_call_operand.hbm [shape: f32[8,32], index: 0, kind: input, shape index: {}]   ;;  %s691_s1 = inlined_call_operand.hbm [shape: f32[32,32], index: 1, kind: input, shape index: {}]   ;;  %s692_s2 = inlined_call_operand.vmem [shape: f32[1,32], index: 2, kind: input, shape index: {}]   ;;  %s693_s3 = inlined_call_operand.hbm [shape: f32[32,32], index: 3, kind: input, shape index: {}]   ;;  %s694_s4 = inlined_call_operand.vmem [shape: f32[1,32], index: 4, kind: input, shape index: {}]   ;;  %s695_s5 = inlined_call_operand.hbm [shape: f32[32,128], index: 5, kind: input, shape index: {}]   ;;  %s696_s6 = inlined_call_operand.vmem [shape: f32[1,128], index: 6, kind: input, shape index: {}]   ;;  %s697_s7 = inlined_call_operand.hbm [shape: f32[8,128], index: 7, kind: output, shape index: {}]  }
   0x1   :  { %13 = vsyncpa [#allocation6], 0 }
   0x2   :  { %14 = vsyncpa [#allocation9], 0 }
   0x3   :  { %15 = vsyncpa [#allocation4], 0  ;;  %s556_s24 = smov [#allocation5]   ;;  %s438_s28 = scalar_lea.hbm %s691_s1, 512 }
   0x4   :  { %s31_s25 = sshll.u32 %s556_s24, 4  ;;  %p439_p0 = scmp.ne.s32.totalorder %s691_s1, %s438_s28  ;;  %s32_s25 = int_to_ptr.vmem [resolvable:$true] %s31_s25 }
   0x5   :  { %p442_p1 = scmp.lt.u32.totalorder %s438_s28, %s691_s1 }
   0x7   :  { %p444_p2 = pnand %p442_p1, %p439_p0 }
   0x9   :  { %447 = shalt.err (!%p444_p2)
}
   0xa   :  { %s448_s10 = scalar_lea.vmem %s32_s25, 512  ;;  %p453_p4 = scmp.lt.s32.totalorder %s32_s25, %s32_s25 }
   0xb   :  { %p449_p3 = scmp.ne.s32.totalorder %s32_s25, %s448_s10  ;;  %p454_p5 = scmp.lt.s32.totalorder %s448_s10, %s448_s10 }
   0xd   :  { %p455_p6 = por %p454_p5, %p453_p4 }
   0xf   :  { %p456_p7 = pnand %p455_p6, %p449_p3 }
  0x11   :  { %459 = shalt.err (!%p456_p7)
}
  0x12   :  { %s557_s11 = smov 128   ;;  %s558_s12 = smov 8  }
  0x13   :  { %37 = dma.hbm_to_vmem [thread:$0]  %s691_s1, 512, %s32_s25, [#allocation6], %s557_s11, %s557_s11, %s558_s12  }
  0x14   :  { %s559_s15 = smov [#allocation2]   ;;  %s560_s17 = smov [#allocation7]  }
  0x15   :  { %s22_s16 = sshll.u32 %s559_s15, 4  ;;  %s45_s18 = sshll.u32 %s560_s17, 4  ;;  %s23_s16 = int_to_ptr.vmem [resolvable:$true] %s22_s16  ;;  %s46_s18 = int_to_ptr.vmem [resolvable:$true] %s45_s18 }
  0x16   :  { %s460_s21 = scalar_lea.hbm %s690_s0, 128 }
  0x17   :  { %p461_p8 = scmp.ne.s32.totalorder %s690_s0, %s460_s21  ;;  %p464_p9 = scmp.lt.u32.totalorder %s460_s21, %s690_s0 }
  0x19   :  { %p466_p10 = pnand %p464_p9, %p461_p8 }
  0x1b   :  { %469 = shalt.err (!%p466_p10)
}
  0x1c   :  { %s470_s1 = scalar_lea.vmem %s23_s16, 128  ;;  %p475_p12 = scmp.lt.s32.totalorder %s23_s16, %s23_s16 }
  0x1d   :  { %p471_p11 = scmp.ne.s32.totalorder %s23_s16, %s470_s1  ;;  %p476_p13 = scmp.lt.s32.totalorder %s470_s1, %s470_s1 }
  0x1f   :  { %p477_p0 = por %p476_p13, %p475_p12 }
  0x21   :  { %p478_p1 = pnand %p477_p0, %p471_p11 }
  0x23   :  { %481 = shalt.err (!%p478_p1)
}
  0x24   :  { %25 = dma.hbm_to_vmem [thread:$0]  %s690_s0, 128, %s23_s16, [#allocation3]  }
  0x25   :  { %s482_s30 = scalar_lea.hbm %s693_s3, 512 }
  0x26   :  { %p483_p2 = scmp.ne.s32.totalorder %s693_s3, %s482_s30  ;;  %p486_p3 = scmp.lt.u32.totalorder %s482_s30, %s693_s3 }
  0x28   :  { %p488_p4 = pnand %p486_p3, %p483_p2 }
  0x2a   :  { %491 = shalt.err (!%p488_p4)
}
  0x2b   :  { %s492_s14 = scalar_lea.vmem %s46_s18, 512  ;;  %p497_p6 = scmp.lt.s32.totalorder %s46_s18, %s46_s18 }
  0x2c   :  { %p493_p5 = scmp.ne.s32.totalorder %s46_s18, %s492_s14  ;;  %p498_p7 = scmp.lt.s32.totalorder %s492_s14, %s492_s14 }
  0x2e   :  { %p499_p8 = por %p498_p7, %p497_p6 }
  0x30   :  { %p500_p9 = pnand %p499_p8, %p493_p5 }
  0x32   :  { %503 = shalt.err (!%p500_p9)
}
  0x33   :  { %51 = dma.hbm_to_vmem [thread:$0]  %s693_s3, 512, %s46_s18, [#allocation6], %s557_s11, %s557_s11, %s558_s12  }
  0x34   :  { %s561_s16 = smov [#allocation8]   ;;  %s504_s21 = scalar_lea.hbm %s695_s5, 512 }
  0x35   :  { %s59_s17 = sshll.u32 %s561_s16, 4  ;;  %p505_p10 = scmp.ne.s32.totalorder %s695_s5, %s504_s21  ;;  %s60_s17 = int_to_ptr.vmem [resolvable:$true] %s59_s17 }
  0x36   :  { %p508_p11 = scmp.lt.u32.totalorder %s504_s21, %s695_s5 }
  0x38   :  { %p510_p12 = pnand %p508_p11, %p505_p10 }
  0x3a   :  { %513 = shalt.err (!%p510_p12)
}
  0x3b   :  { %s514_s1 = scalar_lea.vmem %s60_s17, 512  ;;  %p519_p0 = scmp.lt.s32.totalorder %s60_s17, %s60_s17 }
  0x3c   :  { %p515_p13 = scmp.ne.s32.totalorder %s60_s17, %s514_s1  ;;  %p520_p1 = scmp.lt.s32.totalorder %s514_s1, %s514_s1 }
  0x3e   :  { %p521_p2 = por %p520_p1, %p519_p0 }
  0x40   :  { %p522_p3 = pnand %p521_p2, %p515_p13 }
  0x42   :  { %525 = shalt.err (!%p522_p3)
}
  0x43   :  { %65 = dma.hbm_to_vmem [thread:$0]  %s695_s5, 512, %s60_s17, [#allocation9], %s557_s11, %s557_s11, %s558_s12  }
  0x44   :  { %548 = dma.done.wait [#allocation3], 128  }
  0x45   :  { %549 = vsyncadd [#allocation3], 4294967168 }
  0x46   :  { %550 = dma.done.wait [#allocation6], 1024  }
  0x47   :  { %551 = vsyncadd [#allocation6], 4294966272 }
  0x48   :  { %552 = dma.done.wait [#allocation9], 512  }
  0x49   :  { %553 = vsyncadd [#allocation9], 4294966784  ;;  %v562_v0 = vmov 0.0|0.0   ;;  %vm563_vm0 = vmmov 0   ;;  %v564_v1 = vmov 0.0   ;;  %v81_v2 = vld [vmem:[#allocation5] sm:$0xff] }
  0x4a   :  { %410 = vmatprep.subr.bf16.mxu0 %v562_v0  ;;  %385 = vmatprep.mubr.msk.f32.mxu0 %vm563_vm0, %v564_v1  ;;  %v82_v3 = vld [vmem:[#allocation5 + $0x8] sm:$0xff]  ;;  %v83_v4 = vld [vmem:[#allocation5 + $0x10] sm:$0xff]  ;;  %v84_v6 = vld [vmem:[#allocation5 + $0x18] sm:$0xff]  ;;  %vm92_vm1 = vcmask 261120   ;;  %s565_s28 = smov [#allocation10]  }
  0x4b   :  { %416 = vmatprep.subr.bf16.mxu1 %v562_v0  ;;  %396 = vmatprep.mubr.msk.f32.mxu1 %vm563_vm0, %v564_v1  ;;  %v411_v5 = vpack.c.bf16 %v82_v3, %v81_v2  ;;  %v414_v7 = vpack.c.bf16 %v84_v6, %v83_v4  ;;  %v80_v8 = vld [vmem:[#allocation2] sm:$0xff]  ;;  %v168_v9 = vld [vmem:[#allocation7] sm:$0xff]  ;;  %v169_v10 = vld [vmem:[#allocation7 + $0x8] sm:$0xff]  ;;  %s345_s29 = sshll.u32 %s565_s28, 4  ;;  %s346_s29 = int_to_ptr.vmem [resolvable:$true] %s345_s29 }
  0x4c   :  { %v417_v11 = vpack.c.bf16 %v169_v10, %v168_v9  ;;  %v170_v12 = vld [vmem:[#allocation7 + $0x10] sm:$0xff]  ;;  %v171_v13 = vld [vmem:[#allocation7 + $0x18] sm:$0xff]  ;;  %v254_v21 = vld [vmem:[#allocation8] sm:$0xff]  ;;  %s526_s30 = scalar_lea.vmem %s346_s29, 128  ;;  %p531_p5 = scmp.lt.s32.totalorder %s346_s29, %s346_s29 }
  0x4d   :  { %412 = vmatpush3.bf16.msra.mxu0 %v411_v5  ;;  %v420_v14 = vpack.c.bf16 %v171_v13, %v170_v12  ;;  %v356_v15 = vld [vmem:[%s692_s2] ss:$0 sm:$0xff]  ;;  %v255_v22 = vld [vmem:[#allocation8 + $0x8] sm:$0xff]  ;;  %v256_v24 = vld [vmem:[#allocation8 + $0x10] sm:$0xff]  ;;  %p527_p4 = scmp.ne.s32.totalorder %s346_s29, %s526_s30  ;;  %p532_p6 = scmp.lt.s32.totalorder %s526_s30, %s526_s30 }
  0x4e   :  { %413 = vmatprep.subr.bf16.mxu0 %v562_v0  ;;  %418 = vmatpush3.bf16.msra.mxu1 %v417_v11  ;;  %v423_v23 = vpack.c.bf16 %v255_v22, %v254_v21  ;;  %v257_v25 = vld [vmem:[#allocation8 + $0x18] sm:$0xff] }
  0x4f   :  { %419 = vmatprep.subr.bf16.mxu1 %v562_v0  ;;  %v426_v26 = vpack.c.bf16 %v257_v25, %v256_v24  ;;  %v358_v27 = vld [vmem:[%s694_s4] ss:$0 sm:$0xff]  ;;  %p533_p7 = por %p532_p6, %p531_p5 }
  0x50   :  { %v360_v33 = vld [vmem:[%s696_s6] ss:$0 sm:$0xff] }
  0x51   :  { %415 = vmatpush3.bf16.msra.mxu0 %v414_v7  ;;  %p534_p8 = pnand %p533_p7, %p527_p4 }
  0x52   :  { %422 = vmatprep.subr.bf16.mxu0 %v562_v0  ;;  %421 = vmatpush3.bf16.msra.mxu1 %v420_v14 }
  0x54   :  { %386 = vmatmul.mubr.msk.f32.vlgmr.msra.gmra.mrb[0].mxu0 %vm92_vm1, %v80_v8 }
  0x55   :  { %407 = vmatprep.mubr.msk.f32.mxu0 %vm563_vm0, %v564_v1  ;;  %424 = vmatpush3.bf16.msra.mxu0 %v423_v23 }
  0x56   :  { %425 = vmatprep.subr.bf16.mxu0 %v562_v0 }
  0x59   :  { %427 = vmatpush3.bf16.msra.mxu0 %v426_v26 }
 0x127   :  { %v162_v16 = vpop.f32.mrb[0].mxu0 }
 0x128   :  { %v163_v17 = vadd.f32 %v356_v15, %v162_v16  ;;  %v387_v18 = vpop.f32.mrb[1].mxu0 }
 0x12a   :  { %v166_v19 = vmul.f32 0.01, %v163_v17 }
 0x12c   :  { %v167_v20 = vmax.f32 %v163_v17, %v166_v19 }
 0x12e   :  { %397 = vmatmul.mubr.msk.f32.vlgmr.msra.gmra.mrb[0].mxu1 %vm92_vm1, %v167_v20 }
 0x201   :  { %v248_v28 = vpop.f32.mrb[0].mxu1 }
 0x202   :  { %v249_v29 = vadd.f32 %v358_v27, %v248_v28  ;;  %v398_v30 = vpop.f32.mrb[1].mxu1 }
 0x204   :  { %v252_v31 = vmul.f32 0.01, %v249_v29 }
 0x206   :  { %v253_v32 = vmax.f32 %v249_v29, %v252_v31 }
 0x208   :  { %408 = vmatmul.mubr.msk.f32.vlgmr.msra.gmra.mrb[2].mxu0 %vm92_vm1, %v253_v32 }
 0x2db   :  { %v334_v34 = vpop.f32.mrb[2].mxu0 }
 0x2dc   :  { %v335_v35 = vadd.f32 %v360_v33, %v334_v34  ;;  %v409_v36 = vpop.f32.mrb[3].mxu0 }
 0x2de   :  { %338 = vst [vmem:[#allocation10] sm:$0xff] %v335_v35 }
 0x2df   :  { %537 = shalt.err (!%p534_p8)
}
 0x2e0   :  { %s538_s9 = scalar_lea.hbm %s697_s7, 128 }
 0x2e1   :  { %p539_p9 = scmp.ne.s32.totalorder %s697_s7, %s538_s9  ;;  %p542_p10 = scmp.lt.u32.totalorder %s538_s9, %s697_s7 }
 0x2e3   :  { %p544_p11 = pnand %p542_p10, %p539_p9 }
 0x2e5   :  { %547 = shalt.err (!%p544_p11)
}
 0x2e6   :  { %348 = dma.vmem_to_hbm [thread:$0]  %s346_s29, 128, %s697_s7, [#allocation4]  }
 0x2e7   :  { %554 = dma.done.wait [#allocation4], 128  }
 0x2e8   :  { %555 = vsyncadd [#allocation4], 4294967168 }
 0x2e9   :  { %352 = vsyncpa [#allocation3], 1 }
 0x2ea   :  { %353 = vsyncpa [#allocation6], 1 }
 0x2eb   :  { %354 = vsyncpa [#allocation9], 1 }
 0x2ec   :  { %355 = vsyncpa [#allocation4], 1 }

</bundles_post_ra>
